<compile_context>
chip_gen: v7x
topology: tpu7x:2x2x1
jax: 0.10.0
libtpu: 0.0.40
codegen_flags: <defaults>
</compile_context>

<pallas_src>
import functools
import math

import jax
import jax.numpy as jnp
from jax import lax
from jax.experimental import pallas as pl
from jax.experimental.pallas import tpu as pltpu

LN_EPS = 1e-5            # torch.nn.LayerNorm default eps
NEG_INF = -1e9           # matches scores.masked_fill_(mask, -1000000000.0)
_GELU_C = math.sqrt(2.0 / math.pi)

# VMEM budget: conservative so the same tiling fits v7x (64 MiB physical per TC) as well
# as v5e/v6e (128 MiB).  Tiles are sized so 2x-buffered activations + 2x resident weight
# blocks stay under _TILE_BUDGET_BYTES; the scoped limit is raised explicitly.
_VMEM_LIMIT_BYTES = 48 * 1024 * 1024
_TILE_BUDGET_BYTES = 32 * 1024 * 1024


# ---------------------------------------------------------------------------
# Tiling helpers
# ---------------------------------------------------------------------------
def _row_tile(m: int, per_row_bytes: int, resident_bytes: int = 0) -> int:
    """Largest row tile with 2x(row tiles) + 2x(resident weights) <= budget."""
    avail = _TILE_BUDGET_BYTES - 2 * resident_bytes
    budget_rows = max(8, avail // max(2 * per_row_bytes, 1))
    if m <= budget_rows:
        return m                                  # whole-array block (always legal)
    t = min(int(budget_rows), m)
    t -= t % 8
    while t > 8 and m % t != 0:
        t -= 8
    return t if (t >= 8 and m % t == 0) else m


def _col_tile(n: int, target: int = 512) -> int:
    """Tile for the d_ff reduction axis (bounds w1/w2 VMEM blocks; critical on v7x)."""
    if n <= target or n % 128 != 0:
        return n
    t = target
    while t > 128 and n % t != 0:
        t -= 128
    return t if n % t == 0 else n


def _seq_tile(s: int, target: int = 256) -> int:
    """Query-sequence tile for the attention kernel."""
    if s <= target or s % target != 0:
        return s
    return target


# ---------------------------------------------------------------------------
# Kernel 1: fused linear  (one x read, one wide matmul, N split outputs)
# ---------------------------------------------------------------------------
def _fused_linear_kernel(x_ref, w_ref, b_ref, *o_refs, widths):
    y = (jnp.dot(x_ref[...], w_ref[...], preferred_element_type=jnp.float32)
         + b_ref[...])
    off = 0
    for o_ref, n in zip(o_refs, widths):
        o_ref[...] = y[:, off:off + n].astype(o_ref.dtype)
        off += n


def _fused_linear(x2d, ws, bs):
    M, K = x2d.shape
    widths = tuple(int(w.shape[1]) for w in ws)
    ntot = sum(widths)
    w = ws[0] if len(ws) == 1 else jnp.concatenate(ws, axis=1)
    b = bs[0] if len(bs) == 1 else jnp.concatenate(bs)
    itemsize = x2d.dtype.itemsize
    resident = (K * ntot + ntot) * itemsize
    tm = _row_tile(M, (K + ntot) * itemsize + ntot * 4, resident)
    kernel = functools.partial(_fused_linear_kernel, widths=widths)
    outs = pl.pallas_call(
        kernel,
        grid=(pl.cdiv(M, tm),),
        in_specs=[
            pl.BlockSpec((tm, K), lambda i: (i, 0)),
            pl.BlockSpec((K, ntot), lambda i: (0, 0)),
            pl.BlockSpec((1, ntot), lambda i: (0, 0)),
        ],
        out_specs=[pl.BlockSpec((tm, n), lambda i: (i, 0)) for n in widths],
        out_shape=[jax.ShapeDtypeStruct((M, n), x2d.dtype) for n in widths],
        compiler_params=pltpu.CompilerParams(
            dimension_semantics=("parallel",),
            vmem_limit_bytes=_VMEM_LIMIT_BYTES),
    )(x2d, w, b.reshape(1, ntot))
    return tuple(outs)


# ---------------------------------------------------------------------------
# Kernel 2: attention for one (batch, q-tile), all heads; head split done in-kernel.
#   q_ref : (tq, H*dk)  (scale already folded into the Q projection)
#   k_ref : (Sk, H*dk)   v_ref : (Sk, H*dv)   bias_ref : (tq, Sk) additive mask
#   ctx_ref : (tq, H*dv) lane-dense          attn_ref : (H, tq, Sk)
# ---------------------------------------------------------------------------
def _attention_kernel(q_ref, k_ref, v_ref, bias_ref, ctx_ref, attn_ref,
                      *, n_heads, d_k, d_v):
    q = q_ref[...]
    k = k_ref[...]
    v = v_ref[...]
    bias = bias_ref[...]
    ctx_parts = []
    for h in range(n_heads):                      # static unroll over heads
        qh = q[:, h * d_k:(h + 1) * d_k]
        kh = k[:, h * d_k:(h + 1) * d_k]
        vh = v[:, h * d_v:(h + 1) * d_v]
        s = lax.dot_general(qh, kh, (((1,), (1,)), ((), ())),
                            preferred_element_type=jnp.float32) + bias
        s = s - jnp.max(s, axis=-1, keepdims=True)         # stable softmax
        p = jnp.exp(s)
        inv = pl.reciprocal(jnp.sum(p, axis=-1, keepdims=True), approx=True)
        a = p * inv
        ctx_parts.append(
            jnp.dot(a.astype(v.dtype), vh, preferred_element_type=jnp.float32))
        attn_ref[h] = a.astype(attn_ref.dtype)
    ctx_ref[...] = jnp.concatenate(ctx_parts, axis=-1).astype(ctx_ref.dtype)


def _attention(q, k, v, bias, *, n_heads, d_k, d_v):
    # q: (B, Sq, H*dk)   k: (B, Sk, H*dk)   v: (B, Sk, H*dv)   bias: (B, Sq, Sk)
    B, Sq, _ = q.shape
    Sk = k.shape[1]
    tq = _seq_tile(Sq)
    kernel = functools.partial(_attention_kernel, n_heads=n_heads, d_k=d_k, d_v=d_v)
    # TODO(synk): if the returned attn matrix is not consumed downstream, drop it and add
    # Sk tiling with online softmax; the module's contract requires returning attn.
    ctx, attn = pl.pallas_call(
        kernel,
        grid=(B, Sq // tq),
        in_specs=[
            pl.BlockSpec((None, tq, n_heads * d_k), lambda b, i: (b, i, 0)),
            pl.BlockSpec((None, Sk, n_heads * d_k), lambda b, i: (b, 0, 0)),
            pl.BlockSpec((None, Sk, n_heads * d_v), lambda b, i: (b, 0, 0)),
            pl.BlockSpec((None, tq, Sk), lambda b, i: (b, i, 0)),
        ],
        out_specs=[
            pl.BlockSpec((None, tq, n_heads * d_v), lambda b, i: (b, i, 0)),
            pl.BlockSpec((None, n_heads, tq, Sk), lambda b, i: (b, 0, i, 0)),
        ],
        out_shape=[
            jax.ShapeDtypeStruct((B, Sq, n_heads * d_v), q.dtype),
            jax.ShapeDtypeStruct((B, n_heads, Sq, Sk), q.dtype),
        ],
        compiler_params=pltpu.CompilerParams(
            dimension_semantics=("parallel", "parallel"),
            vmem_limit_bytes=_VMEM_LIMIT_BYTES),
    )(q, k, v, bias)
    return ctx, attn


# ---------------------------------------------------------------------------
# Kernel 3: output projection + residual + LayerNorm (fused)
# ---------------------------------------------------------------------------
def _out_proj_ln_kernel(x_ref, w_ref, b_ref, res_ref, g_ref, beta_ref, o_ref):
    y = (jnp.dot(x_ref[...], w_ref[...], preferred_element_type=jnp.float32)
         + b_ref[...] + res_ref[...])
    mean = jnp.mean(y, axis=-1, keepdims=True)
    cent = y - mean
    var = jnp.mean(cent * cent, axis=-1, keepdims=True)
    y = cent * lax.rsqrt(var + LN_EPS)
    o_ref[...] = (y * g_ref[...] + beta_ref[...]).astype(o_ref.dtype)


def _out_proj_ln(ctx2d, w, b, res2d, g, beta):
    M, K = ctx2d.shape
    N = w.shape[1]
    itemsize = ctx2d.dtype.itemsize
    resident = (K * N + 3 * N) * itemsize
    tm = _row_tile(M, (K + 2 * N) * itemsize + N * 4, resident)
    return pl.pallas_call(
        _out_proj_ln_kernel,
        grid=(pl.cdiv(M, tm),),
        in_specs=[
            pl.BlockSpec((tm, K), lambda i: (i, 0)),
            pl.BlockSpec((K, N), lambda i: (0, 0)),
            pl.BlockSpec((1, N), lambda i: (0, 0)),
            pl.BlockSpec((tm, N), lambda i: (i, 0)),
            pl.BlockSpec((1, N), lambda i: (0, 0)),
            pl.BlockSpec((1, N), lambda i: (0, 0)),
        ],
        out_specs=pl.BlockSpec((tm, N), lambda i: (i, 0)),
        out_shape=jax.ShapeDtypeStruct((M, N), ctx2d.dtype),
        compiler_params=pltpu.CompilerParams(
            dimension_semantics=("parallel",),
            vmem_limit_bytes=_VMEM_LIMIT_BYTES),
    )(ctx2d, w, b.reshape(1, N), res2d, g.reshape(1, N), beta.reshape(1, N))


# ---------------------------------------------------------------------------
# Kernel 4: position-wise FFN (Linear -> tanh-GELU -> Linear) + residual + LN,
# with a reduction grid axis over d_ff and an f32 accumulator scratch.
# ---------------------------------------------------------------------------
def _ffn_kernel(x_ref, w1_ref, b1_ref, w2_ref, b2_ref, g_ref, beta_ref, o_ref, acc_ref):
    kf = pl.program_id(1)

    @pl.when(kf == 0)
    def _():
        acc_ref[...] = jnp.zeros_like(acc_ref)

    x = x_ref[...]
    h = jnp.dot(x, w1_ref[...], preferred_element_type=jnp.float32) + b1_ref[...]
    h = 0.5 * h * (1.0 + jnp.tanh(_GELU_C * (h + 0.044715 * h * h * h)))   # tanh-GELU
    acc_ref[...] += jnp.dot(h, w2_ref[...], preferred_element_type=jnp.float32)

    @pl.when(kf == pl.num_programs(1) - 1)
    def _():
        y = acc_ref[...] + b2_ref[...] + x.astype(jnp.float32)             # residual
        mean = jnp.mean(y, axis=-1, keepdims=True)
        cent = y - mean
        var = jnp.mean(cent * cent, axis=-1, keepdims=True)
        y = cent * lax.rsqrt(var + LN_EPS)
        o_ref[...] = (y * g_ref[...] + beta_ref[...]).astype(o_ref.dtype)


def _ffn(x2d, p):
    M, Dm = x2d.shape
    Dff = p["w1"].shape[1]
    tf = _col_tile(Dff)
    itemsize = x2d.dtype.itemsize
    resident = (Dm * tf + tf + tf * Dm + 3 * Dm) * itemsize     # w1, b1, w2, b2/g/beta blocks
    per_row = (2 * Dm) * itemsize + (Dm + tf) * 4               # x/out tiles + f32 acc + hidden
    tm = _row_tile(M, per_row, resident)
    return pl.pallas_call(
        _ffn_kernel,
        grid=(pl.cdiv(M, tm), Dff // tf),
        in_specs=[
            pl.BlockSpec((tm, Dm), lambda i, kf: (i, 0)),
            pl.BlockSpec((Dm, tf), lambda i, kf: (0, kf)),
            pl.BlockSpec((1, tf), lambda i, kf: (0, kf)),
            pl.BlockSpec((tf, Dm), lambda i, kf: (kf, 0)),
            pl.BlockSpec((1, Dm), lambda i, kf: (0, 0)),
            pl.BlockSpec((1, Dm), lambda i, kf: (0, 0)),
            pl.BlockSpec((1, Dm), lambda i, kf: (0, 0)),
        ],
        out_specs=pl.BlockSpec((tm, Dm), lambda i, kf: (i, 0)),
        out_shape=jax.ShapeDtypeStruct((M, Dm), x2d.dtype),
        scratch_shapes=[pltpu.VMEM((tm, Dm), jnp.float32)],
        compiler_params=pltpu.CompilerParams(
            dimension_semantics=("parallel", "arbitrary"),
            vmem_limit_bytes=_VMEM_LIMIT_BYTES),
    )(x2d, p["w1"], p["b1"].reshape(1, Dff), p["w2"],
      p["b2"].reshape(1, Dm), p["ln_g"].reshape(1, Dm), p["ln_b"].reshape(1, Dm))


# ---------------------------------------------------------------------------
# Module-level wrappers (forward pass of the PyTorch DecoderLayer)
# ---------------------------------------------------------------------------
def _multi_head_attention(p, q_in, kv_in, bias, *, n_heads, d_k, d_v, fuse_qkv):
    B, Sq, Dm = q_in.shape
    Sk = kv_in.shape[1]
    scale = 1.0 / math.sqrt(d_k)
    wq_s = p["wq"] * scale                        # fold 1/sqrt(d_k) into the Q projection
    bq_s = p["bq"] * scale
    if fuse_qkv:
        # Self-attention: Q, K, V all from q_in -> one fused pallas_call (x read once).
        q2d, k2d, v2d = _fused_linear(
            q_in.reshape(B * Sq, Dm),
            [wq_s, p["wk"], p["wv"]], [bq_s, p["bk"], p["bv"]])
    else:
        # Cross-attention: Q from q_in, fused K|V from kv_in (enc_outputs read once).
        (q2d,) = _fused_linear(q_in.reshape(B * Sq, Dm), [wq_s], [bq_s])
        k2d, v2d = _fused_linear(
            kv_in.reshape(B * Sk, Dm), [p["wk"], p["wv"]], [p["bk"], p["bv"]])
    # (B, S, H*d) layout only — no head transposes; heads are split inside the kernel.
    q = q2d.reshape(B, Sq, n_heads * d_k)
    k = k2d.reshape(B, Sk, n_heads * d_k)
    v = v2d.reshape(B, Sk, n_heads * d_v)
    ctx, attn = _attention(q, k, v, bias, n_heads=n_heads, d_k=d_k, d_v=d_v)
    out2d = _out_proj_ln(ctx.reshape(B * Sq, n_heads * d_v), p["wo"], p["bo"],
                         q_in.reshape(B * Sq, Dm), p["ln_g"], p["ln_b"])
    return out2d.reshape(B, Sq, Dm), attn


def decoder_layer(params, dec_inputs, enc_outputs,
                  dec_self_attn_mask, dec_enc_attn_mask, *, n_heads, d_k, d_v):
    # Precompute additive masks once (nonzero == masked, as in masked_fill_).
    self_bias = jnp.where(dec_self_attn_mask != 0,
                          jnp.float32(NEG_INF), jnp.float32(0.0))
    enc_bias = jnp.where(dec_enc_attn_mask != 0,
                         jnp.float32(NEG_INF), jnp.float32(0.0))
    x, self_attn = _multi_head_attention(
        params["self_attn"], dec_inputs, dec_inputs, self_bias,
        n_heads=n_heads, d_k=d_k, d_v=d_v, fuse_qkv=True)
    x, enc_attn = _multi_head_attention(
        params["enc_attn"], x, enc_outputs, enc_bias,
        n_heads=n_heads, d_k=d_k, d_v=d_v, fuse_qkv=False)
    B, S, Dm = x.shape
    x = _ffn(x.reshape(B * S, Dm), params["ffn"]).reshape(B, S, Dm)
    return x, self_attn, enc_attn


# ---------------------------------------------------------------------------
# Deterministic parameter construction (mirrors nn.Linear / nn.LayerNorm init)
# ---------------------------------------------------------------------------
def _linear_init(key, fan_in, fan_out):
    kw, kb = jax.random.split(key)
    bound = 1.0 / math.sqrt(fan_in)
    w = jax.random.uniform(kw, (fan_in, fan_out), jnp.float32, -bound, bound)
    b = jax.random.uniform(kb, (fan_out,), jnp.float32, -bound, bound)
    return w, b


def _mha_init(key, d_model, d_k, d_v, n_heads):
    ks = jax.random.split(key, 4)
    wq, bq = _linear_init(ks[0], d_model, d_k * n_heads)
    wk, bk = _linear_init(ks[1], d_model, d_k * n_heads)
    wv, bv = _linear_init(ks[2], d_model, d_v * n_heads)
    wo, bo = _linear_init(ks[3], n_heads * d_v, d_model)
    return dict(wq=wq, bq=bq, wk=wk, bk=bk, wv=wv, bv=bv, wo=wo, bo=bo,
                ln_g=jnp.ones((d_model,), jnp.float32),
                ln_b=jnp.zeros((d_model,), jnp.float32))


def _ffn_init(key, d_model, d_ff):
    k1, k2 = jax.random.split(key)
    w1, b1 = _linear_init(k1, d_model, d_ff)
    w2, b2 = _linear_init(k2, d_ff, d_model)
    return dict(w1=w1, b1=b1, w2=w2, b2=b2,
                ln_g=jnp.ones((d_model,), jnp.float32),
                ln_b=jnp.zeros((d_model,), jnp.float32))


def init_decoder_layer_params(key, d_model, d_ff, d_k, d_v, n_heads):
    k1, k2, k3 = jax.random.split(key, 3)
    return dict(self_attn=_mha_init(k1, d_model, d_k, d_v, n_heads),
                enc_attn=_mha_init(k2, d_model, d_k, d_v, n_heads),
                ffn=_ffn_init(k3, d_model, d_ff))


# ---------------------------------------------------------------------------
# Pure-JAX reference (mirrors the PyTorch module math exactly)
# ---------------------------------------------------------------------------
def _layer_norm_ref(x, g, b):
    mean = jnp.mean(x, axis=-1, keepdims=True)
    var = jnp.mean((x - mean) ** 2, axis=-1, keepdims=True)
    return (x - mean) / jnp.sqrt(var + LN_EPS) * g + b


def _mha_ref(p, q_in, k_in, v_in, mask, n_heads, d_k, d_v):
    B, Sq, Dm = q_in.shape
    Sk = k_in.shape[1]
    q = (q_in @ p["wq"] + p["bq"]).reshape(B, Sq, n_heads, d_k).transpose(0, 2, 1, 3)
    k = (k_in @ p["wk"] + p["bk"]).reshape(B, Sk, n_heads, d_k).transpose(0, 2, 1, 3)
    v = (v_in @ p["wv"] + p["bv"]).reshape(B, Sk, n_heads, d_v).transpose(0, 2, 1, 3)
    scores = jnp.einsum("bhqd,bhkd->bhqk", q, k) / math.sqrt(d_k)
    scores = jnp.where(mask[:, None, :, :] != 0, NEG_INF, scores)
    attn = jax.nn.softmax(scores, axis=-1)
    ctx = jnp.einsum("bhqk,bhkd->bhqd", attn, v)
    ctx = ctx.transpose(0, 2, 1, 3).reshape(B, Sq, n_heads * d_v)
    out = ctx @ p["wo"] + p["bo"]
    return _layer_norm_ref(out + q_in, p["ln_g"], p["ln_b"]), attn


def _ffn_ref(p, x):
    h = x @ p["w1"] + p["b1"]
    h = 0.5 * h * (1.0 + jnp.tanh(_GELU_C * (h + 0.044715 * h ** 3)))
    y = h @ p["w2"] + p["b2"]
    return _layer_norm_ref(y + x, p["ln_g"], p["ln_b"])


def decoder_layer_ref(params, dec_inputs, enc_outputs, self_mask, enc_mask,
                      *, n_heads, d_k, d_v):
    x, self_attn = _mha_ref(params["self_attn"], dec_inputs, dec_inputs, dec_inputs,
                            self_mask, n_heads, d_k, d_v)
    x, enc_attn = _mha_ref(params["enc_attn"], x, enc_outputs, enc_outputs,
                           enc_mask, n_heads, d_k, d_v)
    x = _ffn_ref(params["ffn"], x)
    return x, self_attn, enc_attn


# ---------------------------------------------------------------------------
# Demo / self-test
# ---------------------------------------------------------------------------
if __name__ == "__main__":
    B, S_DEC, S_ENC = 2, 8, 16
    D_MODEL, D_FF, D_K, D_V, N_HEADS = 32, 64, 8, 8, 4

    root = jax.random.PRNGKey(0)
    k_dec, k_enc, k_par = jax.random.split(root, 3)
    dec_inputs = jax.random.normal(k_dec, (B, S_DEC, D_MODEL), dtype=jnp.float32)
    enc_outputs = jax.random.normal(k_enc, (B, S_ENC, D_MODEL), dtype=jnp.float32)

    # Masks: nonzero == masked (matches masked_fill_ on a bool mask).
    causal = jnp.triu(jnp.ones((S_DEC, S_DEC), jnp.float32), k=1)
    dec_self_attn_mask = jnp.broadcast_to(causal, (B, S_DEC, S_DEC))
    dec_enc_attn_mask = jnp.zeros((B, S_DEC, S_ENC), jnp.float32)
    dec_enc_attn_mask = dec_enc_attn_mask.at[1, :, S_ENC - 4:].set(1.0)  # pad mask

    params = init_decoder_layer_params(k_par, D_MODEL, D_FF, D_K, D_V, N_HEADS)

    out, self_attn, enc_attn = decoder_layer(
        params, dec_inputs, enc_outputs, dec_self_attn_mask, dec_enc_attn_mask,
        n_heads=N_HEADS, d_k=D_K, d_v=D_V)
    out = jax.block_until_ready(out)

    ref_out, ref_self_attn, ref_enc_attn = decoder_layer_ref(
        params, dec_inputs, enc_outputs, dec_self_attn_mask, dec_enc_attn_mask,
        n_heads=N_HEADS, d_k=D_K, d_v=D_V)

    assert out.shape == (B, S_DEC, D_MODEL) and out.dtype == jnp.float32
    assert self_attn.shape == (B, N_HEADS, S_DEC, S_DEC)
    assert enc_attn.shape == (B, N_HEADS, S_DEC, S_ENC)
    assert jnp.allclose(out, ref_out, rtol=3e-3, atol=3e-3), "dec_outputs mismatch"
    assert jnp.allclose(self_attn, ref_self_attn, rtol=3e-3, atol=3e-3), "self-attn mismatch"
    assert jnp.allclose(enc_attn, ref_enc_attn, rtol=3e-3, atol=3e-3), "enc-attn mismatch"

    print("KERNEL_OK")
</pallas_src>

<mosaic_0001>
module attributes {stable_mosaic.version = 11 : i64} {
  func.func @_fused_linear_kernel(%arg0: i32, %arg1: memref<16x32xf32, #tpu.memory_space<vmem>>, %arg2: memref<32x96xf32, #tpu.memory_space<vmem>>, %arg3: memref<1x96xf32, #tpu.memory_space<vmem>>, %arg4: memref<16x32xf32, #tpu.memory_space<vmem>>, %arg5: memref<16x32xf32, #tpu.memory_space<vmem>>, %arg6: memref<16x32xf32, #tpu.memory_space<vmem>>) attributes {dimension_semantics = [#tpu.dimension_semantics<parallel>], iteration_bounds = array<i64: 1>, scalar_prefetch = 0 : i64, scratch_operands = 0 : i64, tpu.core_type = #tpu.core_type<tc>, window_params = [{transform_indices = @transform_0, window_bounds = array<i64: 16, 32>}, {pipeline_mode = #tpu.pipeline_mode<synchronous>, transform_indices = @transform_1, window_bounds = array<i64: 32, 96>}, {pipeline_mode = #tpu.pipeline_mode<synchronous>, transform_indices = @transform_2, window_bounds = array<i64: 1, 96>}, {transform_indices = @transform_3, window_bounds = array<i64: 16, 32>}, {transform_indices = @transform_4, window_bounds = array<i64: 16, 32>}, {transform_indices = @transform_5, window_bounds = array<i64: 16, 32>}]} {
    %c0 = arith.constant 0 : index
    %c0_0 = arith.constant 0 : index
    %0 = vector.load %arg1[%c0, %c0_0] : memref<16x32xf32, #tpu.memory_space<vmem>>, vector<16x32xf32>
    %c0_1 = arith.constant 0 : index
    %c0_2 = arith.constant 0 : index
    %1 = vector.load %arg2[%c0_1, %c0_2] : memref<32x96xf32, #tpu.memory_space<vmem>>, vector<32x96xf32>
    %cst = arith.constant dense<0.000000e+00> : vector<16x96xf32>
    %2 = tpu.matmul %0, %1, %cst {dimension_numbers = #tpu.dot_dimension_numbers<[1], [0], [0], [1], [0, 0, 1, 1], [], []>} : vector<16x32xf32>, vector<32x96xf32>, vector<16x96xf32> -> vector<16x96xf32>
    %c0_3 = arith.constant 0 : index
    %c0_4 = arith.constant 0 : index
    %3 = vector.load %arg3[%c0_3, %c0_4] : memref<1x96xf32, #tpu.memory_space<vmem>>, vector<1x96xf32>
    %4 = vector.broadcast %3 : vector<1x96xf32> to vector<16x96xf32>
    %5 = arith.addf %2, %4 : vector<16x96xf32>
    %6 = vector.extract_strided_slice %5 {offsets = [0, 0], sizes = [16, 32], strides = [1, 1]} : vector<16x96xf32> to vector<16x32xf32>
    %c0_5 = arith.constant 0 : index
    %c0_6 = arith.constant 0 : index
    %7 = vector.load %arg4[%c0_5, %c0_6] : memref<16x32xf32, #tpu.memory_space<vmem>>, vector<16x32xf32>
    tpu.vector_store %arg4[%c0_5, %c0_6], %6 {strides = array<i32>} : memref<16x32xf32, #tpu.memory_space<vmem>>, vector<16x32xf32>,
    %8 = vector.extract_strided_slice %5 {offsets = [0, 32], sizes = [16, 32], strides = [1, 1]} : vector<16x96xf32> to vector<16x32xf32>
    %c0_7 = arith.constant 0 : index
    %c0_8 = arith.constant 0 : index
    %9 = vector.load %arg5[%c0_7, %c0_8] : memref<16x32xf32, #tpu.memory_space<vmem>>, vector<16x32xf32>
    tpu.vector_store %arg5[%c0_7, %c0_8], %8 {strides = array<i32>} : memref<16x32xf32, #tpu.memory_space<vmem>>, vector<16x32xf32>,
    %10 = vector.extract_strided_slice %5 {offsets = [0, 64], sizes = [16, 32], strides = [1, 1]} : vector<16x96xf32> to vector<16x32xf32>
    %c0_9 = arith.constant 0 : index
    %c0_10 = arith.constant 0 : index
    %11 = vector.load %arg6[%c0_9, %c0_10] : memref<16x32xf32, #tpu.memory_space<vmem>>, vector<16x32xf32>
    tpu.vector_store %arg6[%c0_9, %c0_10], %10 {strides = array<i32>} : memref<16x32xf32, #tpu.memory_space<vmem>>, vector<16x32xf32>,
    return
  }
  func.func @transform_0(%arg0: i32) -> (i32, i32) {
    %c0_i32 = arith.constant 0 : i32
    %c0_i32_0 = arith.constant 0 : i32
    return %arg0, %c0_i32 : i32, i32
  }
  func.func @transform_1(%arg0: i32) -> (i32, i32) {
    %c0_i32 = arith.constant 0 : i32
    %c0_i32_0 = arith.constant 0 : i32
    %c0_i32_1 = arith.constant 0 : i32
    return %c0_i32, %c0_i32_0 : i32, i32
  }
  func.func @transform_2(%arg0: i32) -> (i32, i32) {
    %c0_i32 = arith.constant 0 : i32
    %c0_i32_0 = arith.constant 0 : i32
    %c0_i32_1 = arith.constant 0 : i32
    return %c0_i32, %c0_i32_0 : i32, i32
  }
  func.func @transform_3(%arg0: i32) -> (i32, i32) {
    %c0_i32 = arith.constant 0 : i32
    %c0_i32_0 = arith.constant 0 : i32
    return %arg0, %c0_i32 : i32, i32
  }
  func.func @transform_4(%arg0: i32) -> (i32, i32) {
    %c0_i32 = arith.constant 0 : i32
    %c0_i32_0 = arith.constant 0 : i32
    return %arg0, %c0_i32 : i32, i32
  }
  func.func @transform_5(%arg0: i32) -> (i32, i32) {
    %c0_i32 = arith.constant 0 : i32
    %c0_i32_0 = arith.constant 0 : i32
    return %arg0, %c0_i32 : i32, i32
  }
}

</mosaic_0001>

<bundles_post_ra>
// kernel: tpu_custom_call.1
= control target key start
LH: loop header
LB: loop body
LE: loop exit
PB: predicated region body
PF: predicated region fallthrough
CT: control target
= control target key end

     0   :  { %11 = vsyncpa [#allocation3], 0  ;;  %s498_s0 = inlined_call_operand.hbm [shape: f32[16,32], index: 0, kind: input, shape index: {}]   ;;  %s499_s1 = inlined_call_operand.hbm [shape: f32[32,96], index: 1, kind: input, shape index: {}]   ;;  %s500_s2 = inlined_call_operand.vmem [shape: f32[1,96], index: 2, kind: input, shape index: {}]   ;;  %s501_s3 = inlined_call_operand.hbm [shape: f32[16,32], index: 3, kind: output, shape index: {0}]   ;;  %s502_s4 = inlined_call_operand.hbm [shape: f32[16,32], index: 4, kind: output, shape index: {1}]   ;;  %s503_s5 = inlined_call_operand.hbm [shape: f32[16,32], index: 5, kind: output, shape index: {2}]  }
   0x1   :  { %12 = vsyncpa [#allocation6], 0 }
   0x2   :  { %13 = vsyncpa [#allocation4], 0 }
   0x3   :  { %14 = vsyncpa [#allocation9], 0  ;;  %s366_s18 = smov [#allocation2]   ;;  %s248_s22 = scalar_lea.hbm %s498_s0, 256 }
   0x4   :  { %s20_s19 = sshll.u32 %s366_s18, 4  ;;  %p249_p0 = scmp.ne.s32.totalorder %s498_s0, %s248_s22  ;;  %s21_s19 = int_to_ptr.vmem [resolvable:$true] %s20_s19 }
   0x5   :  { %p252_p1 = scmp.lt.u32.totalorder %s248_s22, %s498_s0 }
   0x7   :  { %p254_p2 = pnand %p252_p1, %p249_p0 }
   0x9   :  { %257 = shalt.err (!%p254_p2)
}
   0xa   :  { %s258_s27 = scalar_lea.vmem %s21_s19, 256  ;;  %p263_p4 = scmp.lt.s32.totalorder %s21_s19, %s21_s19 }
   0xb   :  { %p259_p3 = scmp.ne.s32.totalorder %s21_s19, %s258_s27  ;;  %p264_p5 = scmp.lt.s32.totalorder %s258_s27, %s258_s27 }
   0xd   :  { %p265_p6 = por %p264_p5, %p263_p4 }
   0xf   :  { %p266_p7 = pnand %p265_p6, %p259_p3 }
  0x11   :  { %269 = shalt.err (!%p266_p7)
}
  0x12   :  { %s367_s28 = smov 128   ;;  %s368_s29 = smov 8  }
  0x13   :  { %26 = dma.hbm_to_vmem [thread:$0]  %s498_s0, 256, %s21_s19, [#allocation3], %s367_s28, %s367_s28, %s368_s29  }
  0x14   :  { %s369_s7 = smov [#allocation5]   ;;  %s270_s11 = scalar_lea.hbm %s499_s1, 512 }
  0x15   :  { %s32_s8 = sshll.u32 %s369_s7, 4  ;;  %p271_p8 = scmp.ne.s32.totalorder %s499_s1, %s270_s11  ;;  %s33_s8 = int_to_ptr.vmem [resolvable:$true] %s32_s8 }
  0x16   :  { %p274_p9 = scmp.lt.u32.totalorder %s270_s11, %s499_s1 }
  0x18   :  { %p276_p10 = pnand %p274_p9, %p271_p8 }
  0x1a   :  { %279 = shalt.err (!%p276_p10)
}
  0x1b   :  { %s280_s16 = scalar_lea.vmem %s33_s8, 512  ;;  %p285_p12 = scmp.lt.s32.totalorder %s33_s8, %s33_s8 }
  0x1c   :  { %p281_p11 = scmp.ne.s32.totalorder %s33_s8, %s280_s16  ;;  %p286_p13 = scmp.lt.s32.totalorder %s280_s16, %s280_s16 }
  0x1e   :  { %p287_p0 = por %p286_p13, %p285_p12 }
  0x20   :  { %p288_p1 = pnand %p287_p0, %p281_p11 }
  0x22   :  { %291 = shalt.err (!%p288_p1)
}
  0x23   :  { %38 = dma.hbm_to_vmem [thread:$0]  %s499_s1, 512, %s33_s8, [#allocation6], %s367_s28, %s367_s28, %s368_s29  }
  0x24   :  { %358 = dma.done.wait [#allocation3], 256  }
  0x25   :  { %359 = vsyncadd [#allocation3], 4294967040 }
  0x26   :  { %360 = dma.done.wait [#allocation6], 512  }
  0x27   :  { %361 = vsyncadd [#allocation6], 4294966784  ;;  %vm60_vm0 = vcmask 261120   ;;  %v49_v0 = vld [vmem:[#allocation5] sm:$0xff]  ;;  %v50_v1 = vld [vmem:[#allocation5 + $0x8] sm:$0xff]  ;;  %s370_s19 = smov [#allocation7]  }
  0x28   :  { %v51_v2 = vld [vmem:[#allocation5 + $0x10] sm:$0xff]  ;;  %v231_v3 = vpack.c.bf16 %v50_v1, %v49_v0  ;;  %v52_v4 = vld [vmem:[#allocation5 + $0x18] sm:$0xff]  ;;  %s167_s20 = sshll.u32 %s370_s19, 4  ;;  %s371_s21 = smov 64   ;;  %s168_s20 = int_to_ptr.vmem [resolvable:$true] %s167_s20 }
  0x29   :  { %v47_v5 = vld [vmem:[#allocation2] sm:$0xff]  ;;  %v235_v6 = vpack.c.bf16 %v52_v4, %v51_v2  ;;  %v48_v7 = vld [vmem:[#allocation2 + $0x8] sm:$0xff]  ;;  %s372_s22 = smov 96   ;;  %s292_s23 = scalar_lea.vmem %s168_s20, 256 }
  0x2a   :  { %228 = vmatprep.mubr.msk.f32.mxu0 %vm60_vm0, %v47_v5  ;;  %232 = vmatprep.subr.bf16.mxu0 %v231_v3  ;;  %v211_v8 = vld [vmem:[%s500_s2] ss:$0 sm:$0xff]  ;;  %p293_p2 = scmp.ne.s32.totalorder %s168_s20, %s292_s23  ;;  %p297_p3 = scmp.lt.s32.totalorder %s168_s20, %s168_s20 }
  0x2b   :  { %234 = vmatpush3.bf16.msra.mxu0 %v231_v3  ;;  %p298_p4 = scmp.lt.s32.totalorder %s292_s23, %s292_s23 }
  0x2c   :  { %236 = vmatprep.subr.bf16.mxu0 %v235_v6 }
  0x2d   :  { %p299_p5 = por %p298_p4, %p297_p3 }
  0x2f   :  { %238 = vmatpush3.bf16.msra.mxu0 %v235_v6  ;;  %p300_p6 = pnand %p299_p5, %p293_p2 }
  0x32   :  { %229 = vmatmul.mubr.msk.f32.vlgmr.msra.gmra.mrb[0].mxu0 %vm60_vm0, %v48_v7 }
 0x105   :  { %v230_v9 = vpop.f32.mrb[0].mxu0 }
 0x106   :  { %v139_v10 = vadd.f32 %v230_v9, %v211_v8  ;;  %v133_v11 = vpop.f32.mrb[1].mxu0 }
 0x107   :  { %v134_v12 = vadd.f32 %v211_v8, %v133_v11 }
 0x108   :  { %143 = vst.msk [vmem:[#allocation7 + $0x8] sm:$0xff] %vm60_vm0, %v139_v10 }
 0x109   :  { %142 = vst.msk [vmem:[#allocation7] sm:$0xff] %vm60_vm0, %v134_v12  ;;  %154 = vrot.lane.b32.xlu1 %v134_v12, %s371_s21  ;;  %146 = vrot.lane.b32.xlu0 %v134_v12, %s372_s22 }
 0x10a   :  { %303 = shalt.err (!%p300_p6)
}
 0x10b   :  { %s304_s25 = scalar_lea.hbm %s501_s3, 256 }
 0x10c   :  { %p305_p7 = scmp.ne.s32.totalorder %s501_s3, %s304_s25  ;;  %p308_p8 = scmp.lt.u32.totalorder %s304_s25, %s501_s3 }
 0x10e   :  { %p310_p9 = pnand %p308_p8, %p305_p7 }
 0x110   :  { %313 = shalt.err (!%p310_p9)
}
 0x111   :  { %173 = dma.vmem_to_hbm [thread:$0]  %s168_s20, 256, %s501_s3, [#allocation4], %s367_s28, %s367_s28, %s368_s29  }
 0x112   :  { %156 = vrot.lane.b32.xlu1 %v139_v10, %s371_s21  ;;  %148 = vrot.lane.b32.xlu0 %v139_v10, %s372_s22  ;;  %s373_s9 = smov [#allocation8]   ;;  %s374_s11 = smov [#allocation10]  }
 0x113   :  { %s179_s10 = sshll.u32 %s373_s9, 4  ;;  %s191_s12 = sshll.u32 %s374_s11, 4  ;;  %s180_s10 = int_to_ptr.vmem [resolvable:$true] %s179_s10  ;;  %s459_s12 = int_to_ptr.vmem [resolvable:$true] %s191_s12 }
 0x114   :  { %s314_s3 = scalar_lea.vmem %s180_s10, 256  ;;  %p319_p11 = scmp.lt.s32.totalorder %s180_s10, %s180_s10 }
 0x115   :  { %p315_p10 = scmp.ne.s32.totalorder %s180_s10, %s314_s3  ;;  %p320_p12 = scmp.lt.s32.totalorder %s314_s3, %s314_s3 }
 0x117   :  { %p321_p13 = por %p320_p12, %p319_p11 }
 0x119   :  { %p322_p0 = pnand %p321_p13, %p315_p10 }
 0x17b   :  { %v155_v13 = vpop.permute.xlu1 %154  ;;  %v147_v14 = vpop.permute.xlu0 %146 }
 0x17c   :  { %160 = vst.msk [vmem:[#allocation10] sm:$0xff] %vm60_vm0, %v155_v13  ;;  %152 = vst.msk [vmem:[#allocation8] sm:$0xff] %vm60_vm0, %v147_v14 }
 0x184   :  { %v157_v15 = vpop.permute.xlu1 %156  ;;  %v149_v16 = vpop.permute.xlu0 %148 }
 0x185   :  { %161 = vst.msk [vmem:[#allocation10 + $0x8] sm:$0xff] %vm60_vm0, %v157_v15  ;;  %153 = vst.msk [vmem:[#allocation8 + $0x8] sm:$0xff] %vm60_vm0, %v149_v16 }
 0x186   :  { %325 = shalt.err (!%p322_p0)
}
 0x187   :  { %s326_s15 = scalar_lea.hbm %s502_s4, 256 }
 0x188   :  { %p327_p1 = scmp.ne.s32.totalorder %s502_s4, %s326_s15  ;;  %p330_p2 = scmp.lt.u32.totalorder %s326_s15, %s502_s4 }
 0x18a   :  { %p332_p3 = pnand %p330_p2, %p327_p1 }
 0x18c   :  { %335 = shalt.err (!%p332_p3)
}
 0x18d   :  { %185 = dma.vmem_to_hbm [thread:$0]  %s180_s10, 256, %s502_s4, [#allocation9], %s367_s28, %s367_s28, %s368_s29  }
 0x18e   :  { %s336_s20 = scalar_lea.vmem %s459_s12, 256  ;;  %p341_p5 = scmp.lt.s32.totalorder %s459_s12, %s459_s12 }
 0x18f   :  { %p337_p4 = scmp.ne.s32.totalorder %s459_s12, %s336_s20  ;;  %p342_p6 = scmp.lt.s32.totalorder %s336_s20, %s336_s20 }
 0x191   :  { %p343_p7 = por %p342_p6, %p341_p5 }
 0x193   :  { %p344_p8 = pnand %p343_p7, %p337_p4 }
 0x195   :  { %347 = shalt.err (!%p344_p8)
}
 0x196   :  { %s348_s23 = scalar_lea.hbm %s503_s5, 256 }
 0x197   :  { %p349_p9 = scmp.ne.s32.totalorder %s503_s5, %s348_s23  ;;  %p352_p10 = scmp.lt.u32.totalorder %s348_s23, %s503_s5 }
 0x199   :  { %p354_p11 = pnand %p352_p10, %p349_p9 }
 0x19b   :  { %357 = shalt.err (!%p354_p11)
}
 0x19c   :  { %197 = dma.vmem_to_hbm [thread:$0]  %s459_s12, 256, %s503_s5, [#allocation9], %s367_s28, %s367_s28, %s368_s29  }
 0x19d   :  { %362 = dma.done.wait [#allocation4], 256  }
 0x19e   :  { %363 = vsyncadd [#allocation4], 4294967040 }
 0x19f   :  { %364 = dma.done.wait [#allocation9], 512  }
 0x1a0   :  { %365 = vsyncadd [#allocation9], 4294966784 }
 0x1a1   :  { %207 = vsyncpa [#allocation3], 1 }
 0x1a2   :  { %208 = vsyncpa [#allocation6], 1 }
 0x1a3   :  { %209 = vsyncpa [#allocation4], 1 }
 0x1a4   :  { %210 = vsyncpa [#allocation9], 1 }

</bundles_post_ra>
